<compile_context>
chip_gen: v6e
topology: v6e:2x2x1
jax: 0.10.0
libtpu: 0.0.40
codegen_flags: <defaults>
</compile_context>

<pallas_src>
import functools

import jax
import jax.numpy as jnp
from jax.experimental import pallas as pl
from jax.experimental.pallas import tpu as pltpu


def _round_up(x: int, m: int) -> int:
    return ((x + m - 1) // m) * m


def _instance_norm_kernel(x_ref, gamma_ref, beta_ref, o_ref, *, eps, hw, denom):
    # x_ref: (ROW_TILE, HW); gamma_ref/beta_ref: (ROW_TILE, 1)
    x = x_ref[...].astype(jnp.float32)

    # Single-pass statistics: both per-row reductions are independent of each
    # other and of the (removed) centering pass.
    s1 = jnp.sum(x, axis=-1, keepdims=True)            # (ROW_TILE, 1)
    s2 = jnp.sum(x * x, axis=-1, keepdims=True)        # (ROW_TILE, 1)
    mean = s1 * (1.0 / hw)
    # Unbiased variance (Bessel's correction) -> matches torch.Tensor.var()
    # used by the reference PyTorch module.
    var = (s2 - hw * mean * mean) * (1.0 / denom)
    inv_std = jax.lax.rsqrt(var + eps)

    g = gamma_ref[...].astype(jnp.float32)              # (ROW_TILE, 1)
    b = beta_ref[...].astype(jnp.float32)
    scale = g * inv_std                                  # (ROW_TILE, 1)
    shift = b - mean * scale                             # (ROW_TILE, 1)
    o_ref[...] = (x * scale + shift).astype(o_ref.dtype)


def instance_norm(x, gamma, beta, eps=1e-5, row_tile=None):
    """x: (N, C, H, W); gamma, beta: (C,). Matches the PyTorch module forward."""
    N, C, H, W = x.shape
    HW = H * W
    rows = N * C

    if row_tile is None:
        # Target ~2 MiB per input block (f32): safe with double buffering on
        # v5e's 16 MiB scoped-VMEM default and well under v6e/v7x limits.
        target_bytes = 2 * 1024 * 1024
        rt = max(8, (target_bytes // max(HW * 4, 1)) // 8 * 8)
        # Prefer >= 2 grid steps when there is enough work (lets v7x use both
        # TensorCores via the "parallel" grid axis).
        half_rows = max(8, _round_up(-(-rows // 2), 8))
        row_tile = int(min(rt, half_rows, _round_up(rows, 8)))
    row_tile = max(8, _round_up(row_tile, 8))

    rows_padded = _round_up(rows, row_tile)

    # Lane-dense layout: (N*C, H*W).
    x2 = x.reshape(rows, HW)
    g2 = jnp.broadcast_to(gamma.reshape(1, C), (N, C)).reshape(rows, 1)
    b2 = jnp.broadcast_to(beta.reshape(1, C), (N, C)).reshape(rows, 1)
    if rows_padded != rows:
        pad = rows_padded - rows
        x2 = jnp.pad(x2, ((0, pad), (0, 0)))
        g2 = jnp.pad(g2, ((0, pad), (0, 0)))
        b2 = jnp.pad(b2, ((0, pad), (0, 0)))

    # TODO(synk): H*W == 1 gives unbiased-variance 0/0 in PyTorch (NaN); we
    # guard the denominator to keep the kernel finite for that degenerate case.
    denom = float(HW - 1) if HW > 1 else 1.0

    kernel = functools.partial(
        _instance_norm_kernel, eps=float(eps), hw=float(HW), denom=denom
    )

    out = pl.pallas_call(
        kernel,
        out_shape=jax.ShapeDtypeStruct((rows_padded, HW), x.dtype),
        grid=(rows_padded // row_tile,),
        in_specs=[
            pl.BlockSpec((row_tile, HW), lambda i: (i, 0)),   # x rows
            pl.BlockSpec((row_tile, 1), lambda i: (i, 0)),    # gamma per row
            pl.BlockSpec((row_tile, 1), lambda i: (i, 0)),    # beta  per row
        ],
        out_specs=pl.BlockSpec((row_tile, HW), lambda i: (i, 0)),
        compiler_params=pltpu.CompilerParams(
            dimension_semantics=("parallel",)
        ),
    )(x2, g2, b2)

    return out[:rows].reshape(N, C, H, W)


def instance_norm_ref(x, gamma, beta, eps=1e-5):
    # Pure-JAX reference replicating the PyTorch forward exactly
    # (torch.Tensor.var default = unbiased).
    xf = x.astype(jnp.float32)
    mean = jnp.mean(xf, axis=(2, 3), keepdims=True)
    hw = x.shape[2] * x.shape[3]
    var = jnp.sum((xf - mean) ** 2, axis=(2, 3), keepdims=True) / (hw - 1)
    y = (xf - mean) / jnp.sqrt(var + eps)
    return (gamma.reshape(1, -1, 1, 1) * y + beta.reshape(1, -1, 1, 1)).astype(x.dtype)


if __name__ == "__main__":
    key = jax.random.PRNGKey(0)
    N, C, H, W = 2, 4, 16, 16

    x = jax.random.normal(key, (N, C, H, W), dtype=jnp.float32)
    # Deterministic parameter init matching nn.Parameter(torch.ones/zeros(C)).
    gamma = jnp.ones((C,), dtype=jnp.float32)
    beta = jnp.zeros((C,), dtype=jnp.float32)

    out = instance_norm(x, gamma, beta)
    out = jax.block_until_ready(out)

    ref = instance_norm_ref(x, gamma, beta)
    assert out.shape == ref.shape and out.dtype == ref.dtype
    assert jnp.allclose(out, ref, atol=1e-5, rtol=1e-5), "mismatch vs reference"

    print("KERNEL_OK")
</pallas_src>

<mosaic_0001>
module attributes {stable_mosaic.version = 11 : i64} {
  func.func @_instance_norm_kernel(%arg0: i32, %arg1: memref<8x256xf32, #tpu.memory_space<vmem>>, %arg2: memref<8x1xf32, #tpu.memory_space<vmem>>, %arg3: memref<8x1xf32, #tpu.memory_space<vmem>>, %arg4: memref<8x256xf32, #tpu.memory_space<vmem>>) attributes {dimension_semantics = [#tpu.dimension_semantics<parallel>], iteration_bounds = array<i64: 1>, scalar_prefetch = 0 : i64, scratch_operands = 0 : i64, tpu.core_type = #tpu.core_type<tc>, window_params = [{transform_indices = @transform_0, window_bounds = array<i64: 8, 256>}, {transform_indices = @transform_1, window_bounds = array<i64: 8, 1>}, {transform_indices = @transform_2, window_bounds = array<i64: 8, 1>}, {transform_indices = @transform_3, window_bounds = array<i64: 8, 256>}]} {
    %c0 = arith.constant 0 : index
    %c0_0 = arith.constant 0 : index
    %0 = vector.load %arg1[%c0, %c0_0] : memref<8x256xf32, #tpu.memory_space<vmem>>, vector<8x256xf32>
    %cst = arith.constant dense<0.000000e+00> : vector<8xf32>
    %1 = vector.multi_reduction <add>, %0, %cst [1] : vector<8x256xf32> to vector<8xf32>
    %2 = vector.shape_cast %1 : vector<8xf32> to vector<8x1xf32>
    %3 = arith.mulf %0, %0 : vector<8x256xf32>
    %cst_1 = arith.constant dense<0.000000e+00> : vector<8xf32>
    %4 = vector.multi_reduction <add>, %3, %cst_1 [1] : vector<8x256xf32> to vector<8xf32>
    %5 = vector.shape_cast %4 : vector<8xf32> to vector<8x1xf32>
    %cst_2 = arith.constant 3.906250e-03 : f32
    %6 = vector.broadcast %cst_2 : f32 to vector<8x1xf32>
    %7 = arith.mulf %2, %6 : vector<8x1xf32>
    %cst_3 = arith.constant 2.560000e+02 : f32
    %8 = vector.broadcast %cst_3 : f32 to vector<8x1xf32>
    %9 = arith.mulf %8, %7 : vector<8x1xf32>
    %10 = arith.mulf %9, %7 : vector<8x1xf32>
    %11 = arith.subf %5, %10 : vector<8x1xf32>
    %cst_4 = arith.constant 0.00392156886 : f32
    %12 = vector.broadcast %cst_4 : f32 to vector<8x1xf32>
    %13 = arith.mulf %11, %12 : vector<8x1xf32>
    %cst_5 = arith.constant 9.99999974E-6 : f32
    %14 = vector.broadcast %cst_5 : f32 to vector<8x1xf32>
    %15 = arith.addf %13, %14 : vector<8x1xf32>
    %16 = math.rsqrt %15 : vector<8x1xf32>
    %c0_6 = arith.constant 0 : index
    %c0_7 = arith.constant 0 : index
    %17 = vector.load %arg2[%c0_6, %c0_7] : memref<8x1xf32, #tpu.memory_space<vmem>>, vector<8x1xf32>
    %c0_8 = arith.constant 0 : index
    %c0_9 = arith.constant 0 : index
    %18 = vector.load %arg3[%c0_8, %c0_9] : memref<8x1xf32, #tpu.memory_space<vmem>>, vector<8x1xf32>
    %19 = arith.mulf %17, %16 : vector<8x1xf32>
    %20 = arith.mulf %7, %19 : vector<8x1xf32>
    %21 = arith.subf %18, %20 : vector<8x1xf32>
    %22 = vector.broadcast %19 : vector<8x1xf32> to vector<8x256xf32>
    %23 = arith.mulf %0, %22 : vector<8x256xf32>
    %24 = vector.broadcast %21 : vector<8x1xf32> to vector<8x256xf32>
    %25 = arith.addf %23, %24 : vector<8x256xf32>
    %c0_10 = arith.constant 0 : index
    %c0_11 = arith.constant 0 : index
    %26 = vector.load %arg4[%c0_10, %c0_11] : memref<8x256xf32, #tpu.memory_space<vmem>>, vector<8x256xf32>
    tpu.vector_store %arg4[%c0_10, %c0_11], %25 {strides = array<i32>} : memref<8x256xf32, #tpu.memory_space<vmem>>, vector<8x256xf32>,
    return
  }
  func.func @transform_0(%arg0: i32) -> (i32, i32) {
    %c0_i32 = arith.constant 0 : i32
    %c0_i32_0 = arith.constant 0 : i32
    return %arg0, %c0_i32 : i32, i32
  }
  func.func @transform_1(%arg0: i32) -> (i32, i32) {
    %c0_i32 = arith.constant 0 : i32
    %c0_i32_0 = arith.constant 0 : i32
    return %arg0, %c0_i32 : i32, i32
  }
  func.func @transform_2(%arg0: i32) -> (i32, i32) {
    %c0_i32 = arith.constant 0 : i32
    %c0_i32_0 = arith.constant 0 : i32
    return %arg0, %c0_i32 : i32, i32
  }
  func.func @transform_3(%arg0: i32) -> (i32, i32) {
    %c0_i32 = arith.constant 0 : i32
    %c0_i32_0 = arith.constant 0 : i32
    return %arg0, %c0_i32 : i32, i32
  }
}

</mosaic_0001>

<bundles_post_ra>
// kernel: tpu_custom_call.1
= control target key start
LH: loop header
LB: loop body
LE: loop exit
PB: predicated region body
PF: predicated region fallthrough
CT: control target
= control target key end

     0   :  { %s132_s0 = inlined_call_operand.vmem [shape: f32[8,256], index: 0, kind: input, shape index: {}]   ;;  %s133_s1 = inlined_call_operand.vmem [shape: f32[8,1], index: 1, kind: input, shape index: {}]   ;;  %s134_s2 = inlined_call_operand.vmem [shape: f32[8,1], index: 2, kind: input, shape index: {}]   ;;  %s135_s3 = inlined_call_operand.hbm [shape: f32[8,256], index: 3, kind: output, shape index: {}]  }
   0x1   :  { %v15_v0 = vld [vmem:[%s132_s0] sm:$0xff]  ;;  %v16_v1 = vld [vmem:[%s132_s0 + $0x8] sm:$0xff] }
   0x2   :  { %8 = vsyncpa [#allocation3], 0  ;;  %v17_v2 = vadd.f32 %v16_v1, %v15_v0  ;;  %v20_v3 = vmul.f32 %v15_v0, %v15_v0  ;;  %v21_v4 = vmul.f32 %v16_v1, %v16_v1  ;;  %v95_v6 = vmov 0   ;;  %v32_v15 = vld [vmem:[%s133_s1] sm:$0xff]  ;;  %s96_s19 = smov [#allocation2]  }
   0x3   :  { %69 = vset.pattern.permute.xlu1 %v95_v6  ;;  %70 = vset.pattern.permute.xlu0 %v95_v6  ;;  %v33_v18 = vld [vmem:[%s134_s2] sm:$0xff]  ;;  %s59_s20 = sshll.u32 %s96_s19, 4  ;;  %s60_s20 = int_to_ptr.vmem [resolvable:$true] %s59_s20 }
   0x4   :  { %18 = vadd.xlane.f32.xlu0 %v17_v2  ;;  %v22_v5 = vadd.f32 %v21_v4, %v20_v3  ;;  %s73_s1 = scalar_lea.vmem %s60_s20, 256  ;;  %p78_p1 = scmp.lt.s32.totalorder %s60_s20, %s60_s20 }
   0x5   :  { %p74_p0 = scmp.ne.s32.totalorder %s60_s20, %s73_s1  ;;  %p79_p2 = scmp.lt.s32.totalorder %s73_s1, %s73_s1 }
   0x7   :  { %p80_p3 = por %p79_p2, %p78_p1 }
   0x8   :  { %23 = vadd.xlane.f32.xlu0 %v22_v5 }
   0x9   :  { %p81_p4 = pnand %p80_p3, %p74_p0 }
  0x8d   :  { %v19_v7 = vpop.xlane.xlu0 %18 }
  0x8e   :  { %v25_v8 = vmul.f32 0.00390625, %v19_v7 }
  0x90   :  { %v26_v9 = vmul.f32 256.0, %v25_v8 }
  0x91   :  { %v24_v10 = vpop.xlane.xlu0 %23 }
  0x92   :  { %v27_v11 = vmul.f32 %v26_v9, %v25_v8 }
  0x94   :  { %v28_v12 = vsub.f32 %v24_v10, %v27_v11 }
  0x96   :  { %v29_v13 = vmul.f32 0.003921569, %v28_v12 }
  0x98   :  { %v30_v14 = vadd.f32 1e-05, %v29_v13 }
  0x9a   :  { %71 = vrsqrt.f32 %v30_v14 }
  0xa7   :  { %v72_v16 = vpop.eup %71 }
  0xa8   :  { %v34_v17 = vmul.f32 %v72_v16, %v32_v15 }
  0xaa   :  { %39 = vperm.xlu1 %69, %v34_v17   ;;  %v35_v19 = vmul.f32 %v34_v17, %v25_v8 }
  0xac   :  { %v36_v20 = vsub.f32 %v33_v18, %v35_v19 }
  0xae   :  { %46 = vperm.xlu1 %69, %v36_v20  }
 0x125   :  { %v40_v21 = vpop.permute.xlu1 %39 }
 0x126   :  { %v42_v22 = vmul.f32 %v40_v21, %v15_v0  ;;  %v43_v23 = vmul.f32 %v40_v21, %v16_v1 }
 0x129   :  { %v47_v24 = vpop.permute.xlu1 %46 }
 0x12a   :  { %v49_v25 = vadd.f32 %v47_v24, %v42_v22  ;;  %v50_v26 = vadd.f32 %v47_v24, %v43_v23 }
 0x12c   :  { %51 = vst [vmem:[#allocation2] sm:$0xff] %v49_v25  ;;  %52 = vst [vmem:[#allocation2 + $0x8] sm:$0xff] %v50_v26 }
 0x12d   :  { %84 = shalt.err (!%p81_p4)
}
 0x12e   :  { %62 = dma.vmem_to_hbm [thread:$0]  %s60_s20, 256, %s135_s3, [#allocation3]  }
 0x12f   :  { %93 = dma.done.wait [#allocation3], 256  }
 0x130   :  { %94 = vsyncadd [#allocation3], 4294967040 }
 0x131   :  { %66 = vsyncpa [#allocation3], 1 }

</bundles_post_ra>
